<compile_context>
chip_gen: v7x
topology: tpu7x:2x2x1
jax: 0.10.0
libtpu: 0.0.40
codegen_flags: <defaults>
</compile_context>

<pallas_src>
import functools

import jax
import jax.numpy as jnp
from jax.experimental import pallas as pl
from jax.experimental.pallas import tpu as pltpu


def _round_up(x, m):
    return -(-x // m) * m


def _choose_block_b(batch):
    """Batch tile: as large as possible (each grid step costs ~0.35us of
    pipeline overhead and re-latches the RHS into the MXU), but split into at
    least 2 blocks when the batch allows it so that
    dimension_semantics=("parallel",) can shard across TensorCores (v7x)."""
    b8 = _round_up(batch, 8)
    block = min(b8, 1024)
    if block == b8 and b8 > 8:
        block = _round_up((b8 + 1) // 2, 8)
    return block


def _discriminator_kernel(x_ref, w1t_ref, b1_ref, w2t_ref, b2_ref, out_ref):
    # x: (Bt, F)   w1t: (F, H)   b1: (1, H)   w2t: (H, Cp)   b2: (1, Cp)
    # Both matmuls are plain [M,K]@[K,N] on pre-transposed weights: no
    # in-kernel transpose. f32 accumulation regardless of operand dtype.
    h = jnp.dot(x_ref[...], w1t_ref[...], preferred_element_type=jnp.float32)
    h = jnp.maximum(h + b1_ref[...], 0.0)          # fc1 bias + ReLU (f32 VPU)

    # TODO(synk): nn.Dropout(0.5) is identity in eval mode; training-mode
    # dropout (pltpu.prng_random_bits mask + 2x rescale) is not implemented.

    h = h.astype(w2t_ref.dtype)
    out = jnp.dot(h, w2t_ref[...], preferred_element_type=jnp.float32)
    out_ref[...] = (out + b2_ref[...]).astype(out_ref.dtype)


def prepare_discriminator_params(w1, b1, w2, b2, *, use_bf16=True):
    """One-time weight preprocessing — call at model load, NOT per forward.

    Hoists all weight-side layout plumbing out of the per-call jit path:
      * transpose to (F, H) / (H, C_pad) for canonical MXU contractions,
      * pad num_classes up to a multiple of 128 (lane-dense unmasked stores),
      * cast matmul weights to bf16 (MXU-native on v5e/v6e/v7x; accumulation
        stays f32 in-kernel).  use_bf16=False is a debug/reference mode.
    PyTorch convention: w1: (H, F_in), w2: (C, H), biases 1-D.
    """
    H, F_in = w1.shape
    C = w2.shape[0]
    C_pad = _round_up(C, 128)
    w_dtype = jnp.bfloat16 if use_bf16 else jnp.float32

    w1t = jnp.asarray(w1, w_dtype).T                                      # (F, H)
    w2t = jnp.pad(jnp.asarray(w2, w_dtype), ((0, C_pad - C), (0, 0))).T  # (H, Cp)
    b1_2d = jnp.asarray(b1, jnp.float32).reshape(1, H)
    b2_2d = jnp.pad(jnp.asarray(b2, jnp.float32), (0, C_pad - C)).reshape(1, C_pad)
    return {"w1t": w1t, "b1": b1_2d, "w2t": w2t, "b2": b2_2d, "num_classes": C}


@functools.partial(jax.jit, static_argnames=("num_classes", "out_dtype"))
def _forward_impl(feature, w1t, b1_2d, w2t, b2_2d, num_classes, out_dtype):
    B, F_in = feature.shape
    H = w1t.shape[1]
    C_pad = w2t.shape[1]

    block_b = _choose_block_b(B)
    B_pad = _round_up(B, block_b)

    # Per-call activation plumbing only: cast to the MXU operand dtype and pad
    # the batch to a whole number of tiles.  (Padded rows pick up the bias too,
    # but they are sliced off below, so this is harmless.)
    x_p = feature.astype(w1t.dtype)
    if B_pad != B:
        x_p = jnp.pad(x_p, ((0, B_pad - B), (0, 0)))

    grid = (B_pad // block_b,)

    bytes_accessed = (
        x_p.size * x_p.dtype.itemsize
        + w1t.size * w1t.dtype.itemsize
        + w2t.size * w2t.dtype.itemsize
        + b1_2d.size * 4 + b2_2d.size * 4
        + B_pad * C_pad * jnp.dtype(out_dtype).itemsize)

    out_padded = pl.pallas_call(
        _discriminator_kernel,
        out_shape=jax.ShapeDtypeStruct((B_pad, C_pad), out_dtype),
        grid=grid,
        in_specs=[
            pl.BlockSpec((block_b, F_in), lambda i: (i, 0)),   # x tile
            pl.BlockSpec((F_in, H), lambda i: (0, 0)),         # w1t (resident)
            pl.BlockSpec((1, H), lambda i: (0, 0)),            # b1
            pl.BlockSpec((H, C_pad), lambda i: (0, 0)),        # w2t (resident)
            pl.BlockSpec((1, C_pad), lambda i: (0, 0)),        # b2
        ],
        out_specs=pl.BlockSpec((block_b, C_pad), lambda i: (i, 0)),
        compiler_params=pltpu.CompilerParams(
            dimension_semantics=("parallel",)),
        cost_estimate=pl.CostEstimate(
            flops=2 * B_pad * F_in * H + 2 * B_pad * H * C_pad,
            transcendentals=0,
            bytes_accessed=bytes_accessed),
    )(x_p, w1t, b1_2d, w2t, b2_2d)

    return out_padded[:B, :num_classes]


def discriminator_forward(feature, params, current_iter=0, *, out_dtype=None):
    """y = fc2(dropout(relu(fc1(grl(feature))))).  GRL is identity in the
    forward pass; `current_iter` only affects the backward gradient scale."""
    del current_iter  # forward-independent
    if out_dtype is None:
        out_dtype = feature.dtype
    return _forward_impl(feature, params["w1t"], params["b1"], params["w2t"],
                         params["b2"], params["num_classes"],
                         jnp.dtype(out_dtype))


def _reference_forward(feature, w1, b1, w2, b2):
    h = jnp.maximum(feature @ w1.T + b1, 0.0)
    return h @ w2.T + b2


if __name__ == "__main__":
    # Shapes consistent with the module: in_features=512, fc1 hidden=512,
    # num_classes=2, small batch.
    B, F_in, H, C = 8, 512, 512, 2

    key = jax.random.PRNGKey(0)
    kx, kw1, kw2 = jax.random.split(key, 3)

    feature = jax.random.normal(kx, (B, F_in), dtype=jnp.float32)
    # Deterministic init matching the module's __init__:
    #   fc1.weight ~ N(0, 0.01), fc1.bias = 0; fc2.weight ~ N(0, 0.3), fc2.bias = 0
    w1 = 0.01 * jax.random.normal(kw1, (H, F_in), dtype=jnp.float32)
    b1 = jnp.zeros((H,), dtype=jnp.float32)
    w2 = 0.3 * jax.random.normal(kw2, (C, H), dtype=jnp.float32)
    b2 = jnp.zeros((C,), dtype=jnp.float32)

    ref = _reference_forward(feature, w1, b1, w2, b2)

    # f32 weight path (debug/reference): exact within tight tolerance.
    params_f32 = prepare_discriminator_params(w1, b1, w2, b2, use_bf16=False)
    out_f32 = jax.block_until_ready(discriminator_forward(feature, params_f32, 0))
    assert out_f32.shape == (B, C) and out_f32.dtype == jnp.float32
    assert jnp.allclose(out_f32, ref, atol=1e-4, rtol=1e-4), "f32 mismatch vs reference"

    # bf16 MXU-operand production path (f32 accumulation in-kernel).
    params_bf16 = prepare_discriminator_params(w1, b1, w2, b2, use_bf16=True)
    out_bf16 = jax.block_until_ready(discriminator_forward(feature, params_bf16, 0))
    assert out_bf16.shape == (B, C)
    assert jnp.allclose(out_bf16, ref, atol=5e-2, rtol=5e-2), "bf16 mismatch vs reference"

    # Larger batch: exercises the multi-block "parallel" grid and batch padding,
    # plus the bf16-output (half writeback) path.
    B2 = 48
    feat_big = jax.random.normal(kx, (B2, F_in), dtype=jnp.float32)
    ref_big = _reference_forward(feat_big, w1, b1, w2, b2)
    out_big = jax.block_until_ready(
        discriminator_forward(feat_big, params_f32, 0, out_dtype=jnp.bfloat16))
    assert out_big.shape == (B2, C) and out_big.dtype == jnp.bfloat16
    assert jnp.allclose(out_big.astype(jnp.float32), ref_big, atol=5e-2, rtol=5e-2), \
        "multi-block/bf16-out mismatch vs reference"

    print("KERNEL_OK")
</pallas_src>

<mosaic_0001>
module attributes {stable_mosaic.version = 11 : i64} {
  func.func @_discriminator_kernel(%arg0: i32, %arg1: memref<8x512xf32, #tpu.memory_space<vmem>>, %arg2: memref<512x512xf32, #tpu.memory_space<vmem>>, %arg3: memref<1x512xf32, #tpu.memory_space<vmem>>, %arg4: memref<512x128xf32, #tpu.memory_space<vmem>>, %arg5: memref<1x128xf32, #tpu.memory_space<vmem>>, %arg6: memref<8x128xf32, #tpu.memory_space<vmem>>) attributes {dimension_semantics = [#tpu.dimension_semantics<parallel>], iteration_bounds = array<i64: 1>, scalar_prefetch = 0 : i64, scratch_operands = 0 : i64, tpu.core_type = #tpu.core_type<tc>, window_params = [{transform_indices = @transform_0, window_bounds = array<i64: 8, 512>}, {pipeline_mode = #tpu.pipeline_mode<synchronous>, transform_indices = @transform_1, window_bounds = array<i64: 512, 512>}, {pipeline_mode = #tpu.pipeline_mode<synchronous>, transform_indices = @transform_2, window_bounds = array<i64: 1, 512>}, {pipeline_mode = #tpu.pipeline_mode<synchronous>, transform_indices = @transform_3, window_bounds = array<i64: 512, 128>}, {pipeline_mode = #tpu.pipeline_mode<synchronous>, transform_indices = @transform_4, window_bounds = array<i64: 1, 128>}, {transform_indices = @transform_5, window_bounds = array<i64: 8, 128>}]} {
    %c0 = arith.constant 0 : index
    %c0_0 = arith.constant 0 : index
    %0 = vector.load %arg1[%c0, %c0_0] : memref<8x512xf32, #tpu.memory_space<vmem>>, vector<8x512xf32>
    %c0_1 = arith.constant 0 : index
    %c0_2 = arith.constant 0 : index
    %1 = vector.load %arg2[%c0_1, %c0_2] : memref<512x512xf32, #tpu.memory_space<vmem>>, vector<512x512xf32>
    %cst = arith.constant dense<0.000000e+00> : vector<8x512xf32>
    %2 = tpu.matmul %0, %1, %cst {dimension_numbers = #tpu.dot_dimension_numbers<[1], [0], [0], [1], [0, 0, 1, 1], [], []>} : vector<8x512xf32>, vector<512x512xf32>, vector<8x512xf32> -> vector<8x512xf32>
    %c0_3 = arith.constant 0 : index
    %c0_4 = arith.constant 0 : index
    %3 = vector.load %arg3[%c0_3, %c0_4] : memref<1x512xf32, #tpu.memory_space<vmem>>, vector<1x512xf32>
    %4 = vector.broadcast %3 : vector<1x512xf32> to vector<8x512xf32>
    %5 = arith.addf %2, %4 : vector<8x512xf32>
    %cst_5 = arith.constant 0.000000e+00 : f32
    %6 = vector.broadcast %cst_5 : f32 to vector<8x512xf32>
    %7 = arith.maximumf %5, %6 : vector<8x512xf32>
    %c0_6 = arith.constant 0 : index
    %c0_7 = arith.constant 0 : index
    %8 = vector.load %arg4[%c0_6, %c0_7] : memref<512x128xf32, #tpu.memory_space<vmem>>, vector<512x128xf32>
    %cst_8 = arith.constant dense<0.000000e+00> : vector<8x128xf32>
    %9 = tpu.matmul %7, %8, %cst_8 {dimension_numbers = #tpu.dot_dimension_numbers<[1], [0], [0], [1], [0, 0, 1, 1], [], []>} : vector<8x512xf32>, vector<512x128xf32>, vector<8x128xf32> -> vector<8x128xf32>
    %c0_9 = arith.constant 0 : index
    %c0_10 = arith.constant 0 : index
    %10 = vector.load %arg5[%c0_9, %c0_10] : memref<1x128xf32, #tpu.memory_space<vmem>>, vector<1x128xf32>
    %11 = vector.broadcast %10 : vector<1x128xf32> to vector<8x128xf32>
    %12 = arith.addf %9, %11 : vector<8x128xf32>
    %c0_11 = arith.constant 0 : index
    %c0_12 = arith.constant 0 : index
    %13 = vector.load %arg6[%c0_11, %c0_12] : memref<8x128xf32, #tpu.memory_space<vmem>>, vector<8x128xf32>
    tpu.vector_store %arg6[%c0_11, %c0_12], %12 {strides = array<i32>} : memref<8x128xf32, #tpu.memory_space<vmem>>, vector<8x128xf32>,
    return
  }
  func.func @transform_0(%arg0: i32) -> (i32, i32) {
    %c0_i32 = arith.constant 0 : i32
    %c0_i32_0 = arith.constant 0 : i32
    return %arg0, %c0_i32 : i32, i32
  }
  func.func @transform_1(%arg0: i32) -> (i32, i32) {
    %c0_i32 = arith.constant 0 : i32
    %c0_i32_0 = arith.constant 0 : i32
    %c0_i32_1 = arith.constant 0 : i32
    return %c0_i32, %c0_i32_0 : i32, i32
  }
  func.func @transform_2(%arg0: i32) -> (i32, i32) {
    %c0_i32 = arith.constant 0 : i32
    %c0_i32_0 = arith.constant 0 : i32
    %c0_i32_1 = arith.constant 0 : i32
    return %c0_i32, %c0_i32_0 : i32, i32
  }
  func.func @transform_3(%arg0: i32) -> (i32, i32) {
    %c0_i32 = arith.constant 0 : i32
    %c0_i32_0 = arith.constant 0 : i32
    %c0_i32_1 = arith.constant 0 : i32
    return %c0_i32, %c0_i32_0 : i32, i32
  }
  func.func @transform_4(%arg0: i32) -> (i32, i32) {
    %c0_i32 = arith.constant 0 : i32
    %c0_i32_0 = arith.constant 0 : i32
    %c0_i32_1 = arith.constant 0 : i32
    return %c0_i32, %c0_i32_0 : i32, i32
  }
  func.func @transform_5(%arg0: i32) -> (i32, i32) {
    %c0_i32 = arith.constant 0 : i32
    %c0_i32_0 = arith.constant 0 : i32
    return %arg0, %c0_i32 : i32, i32
  }
}

</mosaic_0001>

<bundles_post_ra>
// kernel: _forward_impl.1
= control target key start
LH: loop header
LB: loop body
LE: loop exit
PB: predicated region body
PF: predicated region fallthrough
CT: control target
= control target key end

     0   :  { %10 = vsyncpa [#allocation3], 0  ;;  %s1405_s0 = inlined_call_operand.hbm [shape: f32[8,512], index: 0, kind: input, shape index: {}]   ;;  %s1406_s1 = inlined_call_operand.hbm [shape: f32[512,512], index: 1, kind: input, shape index: {}]   ;;  %s1407_s2 = inlined_call_operand.vmem [shape: f32[1,512], index: 2, kind: input, shape index: {}]   ;;  %s1408_s3 = inlined_call_operand.hbm [shape: f32[512,128], index: 3, kind: input, shape index: {}]   ;;  %s1409_s4 = inlined_call_operand.vmem [shape: f32[1,128], index: 4, kind: input, shape index: {}]   ;;  %s1410_s5 = inlined_call_operand.vmem [shape: f32[8,128], index: 5, kind: output, shape index: {}]  }
   0x1   :  { %11 = vsyncpa [#allocation5], 0  ;;  %s1323_s18 = smov [#allocation4]   ;;  %s1253_s22 = scalar_lea.hbm %s1406_s1, 32768 }
   0x2   :  { %s27_s19 = sshll.u32 %s1323_s18, 4  ;;  %p1254_p0 = scmp.ne.s32.totalorder %s1406_s1, %s1253_s22  ;;  %s28_s19 = int_to_ptr.vmem [resolvable:$true] %s27_s19 }
   0x3   :  { %p1257_p1 = scmp.lt.u32.totalorder %s1253_s22, %s1406_s1 }
   0x5   :  { %p1259_p2 = pnand %p1257_p1, %p1254_p0 }
   0x7   :  { %1262 = shalt.err (!%p1259_p2)
}
   0x8   :  { %s1263_s27 = scalar_lea.vmem %s28_s19, 32768  ;;  %p1268_p4 = scmp.lt.s32.totalorder %s28_s19, %s28_s19 }
   0x9   :  { %p1264_p3 = scmp.ne.s32.totalorder %s28_s19, %s1263_s27  ;;  %p1269_p5 = scmp.lt.s32.totalorder %s1263_s27, %s1263_s27 }
   0xb   :  { %p1270_p6 = por %p1269_p5, %p1268_p4 }
   0xd   :  { %p1271_p7 = pnand %p1270_p6, %p1264_p3 }
   0xf   :  { %1274 = shalt.err (!%p1271_p7)
}
  0x10   :  { %s1324_s28 = smov 512   ;;  %s1325_s29 = smov 32  }
  0x11   :  { %33 = dma.hbm_to_vmem [thread:$0]  %s1406_s1, 32768, %s28_s19, [#allocation5], %s1324_s28, %s1324_s28, %s1325_s29  }
  0x12   :  { %s1326_s7 = smov [#allocation2]   ;;  %s1327_s9 = smov [#allocation6]  }
  0x13   :  { %s18_s8 = sshll.u32 %s1326_s7, 4  ;;  %s41_s10 = sshll.u32 %s1327_s9, 4  ;;  %s19_s8 = int_to_ptr.vmem [resolvable:$true] %s18_s8  ;;  %s42_s10 = int_to_ptr.vmem [resolvable:$true] %s41_s10 }
  0x14   :  { %s1275_s13 = scalar_lea.hbm %s1405_s0, 512 }
  0x15   :  { %p1276_p8 = scmp.ne.s32.totalorder %s1405_s0, %s1275_s13  ;;  %p1279_p9 = scmp.lt.u32.totalorder %s1275_s13, %s1405_s0 }
  0x17   :  { %p1281_p10 = pnand %p1279_p9, %p1276_p8 }
  0x19   :  { %1284 = shalt.err (!%p1281_p10)
}
  0x1a   :  { %s1285_s1 = scalar_lea.vmem %s19_s8, 512  ;;  %p1290_p12 = scmp.lt.s32.totalorder %s19_s8, %s19_s8 }
  0x1b   :  { %p1286_p11 = scmp.ne.s32.totalorder %s19_s8, %s1285_s1  ;;  %p1291_p13 = scmp.lt.s32.totalorder %s1285_s1, %s1285_s1 }
  0x1d   :  { %p1292_p0 = por %p1291_p13, %p1290_p12 }
  0x1f   :  { %p1293_p1 = pnand %p1292_p0, %p1286_p11 }
  0x21   :  { %1296 = shalt.err (!%p1293_p1)
}
  0x22   :  { %21 = dma.hbm_to_vmem [thread:$0]  %s1405_s0, 512, %s19_s8, [#allocation3]  }
  0x23   :  { %s1297_s22 = scalar_lea.hbm %s1408_s3, 8192 }
  0x24   :  { %p1298_p2 = scmp.ne.s32.totalorder %s1408_s3, %s1297_s22  ;;  %p1301_p3 = scmp.lt.u32.totalorder %s1297_s22, %s1408_s3 }
  0x26   :  { %p1303_p4 = pnand %p1301_p3, %p1298_p2 }
  0x28   :  { %1306 = shalt.err (!%p1303_p4)
}
  0x29   :  { %s1307_s27 = scalar_lea.vmem %s42_s10, 8192  ;;  %p1312_p6 = scmp.lt.s32.totalorder %s42_s10, %s42_s10 }
  0x2a   :  { %p1308_p5 = scmp.ne.s32.totalorder %s42_s10, %s1307_s27  ;;  %p1313_p7 = scmp.lt.s32.totalorder %s1307_s27, %s1307_s27 }
  0x2c   :  { %p1314_p8 = por %p1313_p7, %p1312_p6 }
  0x2e   :  { %p1315_p9 = pnand %p1314_p8, %p1308_p5 }
  0x30   :  { %1318 = shalt.err (!%p1315_p9)
}
  0x31   :  { %s1328_s0 = smov 128   ;;  %s1329_s28 = smov 8  }
  0x32   :  { %47 = dma.hbm_to_vmem [thread:$0]  %s1408_s3, 8192, %s42_s10, [#allocation5], %s1328_s0, %s1328_s0, %s1329_s28  }
  0x33   :  { %1319 = dma.done.wait [#allocation3], 512  }
  0x34   :  { %1320 = vsyncadd [#allocation3], 4294966784 }
  0x35   :  { %1321 = dma.done.wait [#allocation5], 40960  }
  0x36   :  { %1322 = vsyncadd [#allocation5], 4294926336  ;;  %v64_v0 = vld [vmem:[#allocation4 + $0x8] sm:$0xff]  ;;  %v66_v2 = vld [vmem:[#allocation4 + $0x18] sm:$0xff] }
  0x37   :  { %v68_v1 = vld [vmem:[#allocation4 + $0x28] sm:$0xff]  ;;  %v70_v4 = vld [vmem:[#allocation4 + $0x38] sm:$0xff]  ;;  %v63_v5 = vld [vmem:[#allocation4] sm:$0xff] }
  0x38   :  { %v918_v3 = vpack.c.bf16 %v68_v1, %v64_v0  ;;  %v67_v6 = vld [vmem:[#allocation4 + $0x20] sm:$0xff]  ;;  %v1046_v7 = vpack.c.bf16 %v70_v4, %v66_v2  ;;  %v65_v9 = vld [vmem:[#allocation4 + $0x10] sm:$0xff]  ;;  %v72_v11 = vld [vmem:[#allocation4 + $0x48] sm:$0xff] }
  0x39   :  { %v920_v8 = vpack.c.bf16 %v67_v6, %v63_v5  ;;  %v69_v10 = vld [vmem:[#allocation4 + $0x30] sm:$0xff]  ;;  %v76_v13 = vld [vmem:[#allocation4 + $0x68] sm:$0xff]  ;;  %v74_v14 = vld [vmem:[#allocation4 + $0x58] sm:$0xff] }
  0x3a   :  { %919 = vmatprep.subr.bf16.mxu0 %v918_v3  ;;  %v1048_v12 = vpack.c.bf16 %v69_v10, %v65_v9  ;;  %v78_v15 = vld [vmem:[#allocation4 + $0x78] sm:$0xff]  ;;  %1047 = vmatprep.subr.bf16.mxu1 %v1046_v7  ;;  %v922_v16 = vpack.c.bf16 %v76_v13, %v72_v11  ;;  %v71_v18 = vld [vmem:[#allocation4 + $0x40] sm:$0xff]  ;;  %v73_v20 = vld [vmem:[#allocation4 + $0x50] sm:$0xff] }
  0x3b   :  { %921 = vmatpush1.bf16.msra.mxu0 %v920_v8  ;;  %v1050_v17 = vpack.c.bf16 %v78_v15, %v74_v14  ;;  %v75_v19 = vld [vmem:[#allocation4 + $0x60] sm:$0xff]  ;;  %v77_v22 = vld [vmem:[#allocation4 + $0x70] sm:$0xff]  ;;  %v80_v23 = vld [vmem:[#allocation4 + $0x88] sm:$0xff] }
  0x3c   :  { %1049 = vmatpush1.bf16.msra.mxu1 %v1048_v12  ;;  %v924_v21 = vpack.c.bf16 %v75_v19, %v71_v18  ;;  %v84_v24 = vld [vmem:[#allocation4 + $0xa8] sm:$0xff]  ;;  %923 = vmatprep.subr.bf16.mxu0 %v922_v16  ;;  %v1052_v25 = vpack.c.bf16 %v77_v22, %v73_v20  ;;  %v82_v27 = vld [vmem:[#allocation4 + $0x98] sm:$0xff]  ;;  %v79_v29 = vld [vmem:[#allocation4 + $0x80] sm:$0xff] }
  0x3d   :  { %1051 = vmatprep.subr.bf16.mxu1 %v1050_v17  ;;  %v926_v26 = vpack.c.bf16 %v84_v24, %v80_v23  ;;  %v86_v28 = vld [vmem:[#allocation4 + $0xb8] sm:$0xff]  ;;  %v83_v31 = vld [vmem:[#allocation4 + $0xa0] sm:$0xff]  ;;  %v81_v32 = vld [vmem:[#allocation4 + $0x90] sm:$0xff] }
  0x3e   :  { %v1054_v30 = vpack.c.bf16 %v86_v28, %v82_v27  ;;  %v85_v33 = vld [vmem:[#allocation4 + $0xb0] sm:$0xff]  ;;  %v928_v34 = vpack.c.bf16 %v83_v31, %v79_v29  ;;  %v88_v35 = vld [vmem:[#allocation4 + $0xc8] sm:$0xff]  ;;  %v90_v37 = vld [vmem:[#allocation4 + $0xd8] sm:$0xff] }
  0x3f   :  { %925 = vmatpush1.bf16.msra.mxu0 %v924_v21  ;;  %v92_v36 = vld [vmem:[#allocation4 + $0xe8] sm:$0xff]  ;;  %v1056_v38 = vpack.c.bf16 %v85_v33, %v81_v32  ;;  %v94_v40 = vld [vmem:[#allocation4 + $0xf8] sm:$0xff]  ;;  %v87_v41 = vld [vmem:[#allocation4 + $0xc0] sm:$0xff] }
  0x40   :  { %1053 = vmatpush1.bf16.msra.mxu1 %v1052_v25  ;;  %927 = vmatprep.subr.bf16.mxu0 %v926_v26  ;;  %v930_v39 = vpack.c.bf16 %v92_v36, %v88_v35  ;;  %v91_v42 = vld [vmem:[#allocation4 + $0xe0] sm:$0xff]  ;;  %v1058_v43 = vpack.c.bf16 %v94_v40, %v90_v37  ;;  %v89_v44 = vld [vmem:[#allocation4 + $0xd0] sm:$0xff]  ;;  %v96_v46 = vld [vmem:[#allocation4 + $0x108] sm:$0xff] }
  0x41   :  { %1055 = vmatprep.subr.bf16.mxu1 %v1054_v30  ;;  %v93_v45 = vld [vmem:[#allocation4 + $0xf0] sm:$0xff]  ;;  %v100_v47 = vld [vmem:[#allocation4 + $0x128] sm:$0xff]  ;;  %v98_v48 = vld [vmem:[#allocation4 + $0x118] sm:$0xff]  ;;  %v932_v50 = vpack.c.bf16 %v91_v42, %v87_v41 }
  0x42   :  { %v102_v49 = vld [vmem:[#allocation4 + $0x138] sm:$0xff]  ;;  %v1060_v51 = vpack.c.bf16 %v93_v45, %v89_v44  ;;  %v934_v52 = vpack.c.bf16 %v100_v47, %v96_v46  ;;  %v95_v53 = vld [vmem:[#allocation4 + $0x100] sm:$0xff]  ;;  %v97_v55 = vld [vmem:[#allocation4 + $0x110] sm:$0xff] }
  0x43   :  { %929 = vmatpush1.bf16.msra.mxu0 %v928_v34  ;;  %v99_v54 = vld [vmem:[#allocation4 + $0x120] sm:$0xff]  ;;  %v1062_v56 = vpack.c.bf16 %v102_v49, %v98_v48  ;;  %v101_v57 = vld [vmem:[#allocation4 + $0x130] sm:$0xff]  ;;  %v104_v58 = vld [vmem:[#allocation4 + $0x148] sm:$0xff] }
  0x44   :  { %1057 = vmatpush1.bf16.msra.mxu1 %v1056_v38  ;;  %931 = vmatprep.subr.bf16.mxu0 %v930_v39  ;;  %v108_v59 = vld [vmem:[#allocation4 + $0x168] sm:$0xff]  ;;  %v106_v60 = vld [vmem:[#allocation4 + $0x158] sm:$0xff]  ;;  %v936_v62 = vpack.c.bf16 %v99_v54, %v95_v53  ;;  %v1064_v63 = vpack.c.bf16 %v101_v57, %v97_v55  ;;  %v103_v1 = vld [vmem:[#allocation4 + $0x140] sm:$0xff] }
  0x45   :  { %1059 = vmatprep.subr.bf16.mxu1 %v1058_v43  ;;  %v110_v61 = vld [vmem:[#allocation4 + $0x178] sm:$0xff]  ;;  %v938_v0 = vpack.c.bf16 %v108_v59, %v104_v58  ;;  %v107_v2 = vld [vmem:[#allocation4 + $0x160] sm:$0xff]  ;;  %v105_v3 = vld [vmem:[#allocation4 + $0x150] sm:$0xff] }
  0x46   :  { %v1066_v4 = vpack.c.bf16 %v110_v61, %v106_v60  ;;  %v109_v5 = vld [vmem:[#allocation4 + $0x170] sm:$0xff]  ;;  %v112_v6 = vld [vmem:[#allocation4 + $0x188] sm:$0xff]  ;;  %v114_v8 = vld [vmem:[#allocation4 + $0x198] sm:$0xff]  ;;  %v940_v10 = vpack.c.bf16 %v107_v2, %v103_v1 }
  0x47   :  { %933 = vmatpush1.bf16.msra.mxu0 %v932_v50  ;;  %v116_v7 = vld [vmem:[#allocation4 + $0x1a8] sm:$0xff]  ;;  %v118_v9 = vld [vmem:[#allocation4 + $0x1b8] sm:$0xff]  ;;  %v1068_v11 = vpack.c.bf16 %v109_v5, %v105_v3  ;;  %v111_v13 = vld [vmem:[#allocation4 + $0x180] sm:$0xff] }
  0x48   :  { %1061 = vmatpush1.bf16.msra.mxu1 %v1060_v51  ;;  %935 = vmatprep.subr.bf16.mxu0 %v934_v52  ;;  %v942_v12 = vpack.c.bf16 %v116_v7, %v112_v6  ;;  %v115_v14 = vld [vmem:[#allocation4 + $0x1a0] sm:$0xff]  ;;  %v113_v15 = vld [vmem:[#allocation4 + $0x190] sm:$0xff]  ;;  %v1070_v16 = vpack.c.bf16 %v118_v9, %v114_v8  ;;  %v120_v18 = vld [vmem:[#allocation4 + $0x1c8] sm:$0xff] }
  0x49   :  { %1063 = vmatprep.subr.bf16.mxu1 %v1062_v56  ;;  %v117_v17 = vld [vmem:[#allocation4 + $0x1b0] sm:$0xff]  ;;  %v124_v19 = vld [vmem:[#allocation4 + $0x1e8] sm:$0xff]  ;;  %v122_v20 = vld [vmem:[#allocation4 + $0x1d8] sm:$0xff]  ;;  %v944_v22 = vpack.c.bf16 %v115_v14, %v111_v13 }
  0x4a   :  { %v126_v21 = vld [vmem:[#allocation4 + $0x1f8] sm:$0xff]  ;;  %v1072_v23 = vpack.c.bf16 %v117_v17, %v113_v15  ;;  %v946_v24 = vpack.c.bf16 %v124_v19, %v120_v18  ;;  %v119_v25 = vld [vmem:[#allocation4 + $0x1c0] sm:$0xff]  ;;  %v121_v27 = vld [vmem:[#allocation4 + $0x1d0] sm:$0xff] }
  0x4b   :  { %937 = vmatpush1.bf16.msra.mxu0 %v936_v62  ;;  %v123_v26 = vld [vmem:[#allocation4 + $0x1e0] sm:$0xff]  ;;  %v1074_v28 = vpack.c.bf16 %v126_v21, %v122_v20  ;;  %v125_v29 = vld [vmem:[#allocation4 + $0x1f0] sm:$0xff]  ;;  %v128_v30 = vld [vmem:[#allocation4 + $0x208] sm:$0xff] }
  0x4c   :  { %1065 = vmatpush1.bf16.msra.mxu1 %v1064_v63  ;;  %939 = vmatprep.subr.bf16.mxu0 %v938_v0  ;;  %v132_v31 = vld [vmem:[#allocation4 + $0x228] sm:$0xff]  ;;  %v130_v32 = vld [vmem:[#allocation4 + $0x218] sm:$0xff]  ;;  %v948_v34 = vpack.c.bf16 %v123_v26, %v119_v25  ;;  %v1076_v35 = vpack.c.bf16 %v125_v29, %v121_v27  ;;  %v127_v37 = vld [vmem:[#allocation4 + $0x200] sm:$0xff] }
  0x4d   :  { %1067 = vmatprep.subr.bf16.mxu1 %v1066_v4  ;;  %v134_v33 = vld [vmem:[#allocation4 + $0x238] sm:$0xff]  ;;  %v950_v36 = vpack.c.bf16 %v132_v31, %v128_v30  ;;  %v131_v38 = vld [vmem:[#allocation4 + $0x220] sm:$0xff]  ;;  %v129_v39 = vld [vmem:[#allocation4 + $0x210] sm:$0xff] }
  0x4e   :  { %v1078_v40 = vpack.c.bf16 %v134_v33, %v130_v32  ;;  %v133_v41 = vld [vmem:[#allocation4 + $0x230] sm:$0xff]  ;;  %v136_v42 = vld [vmem:[#allocation4 + $0x248] sm:$0xff]  ;;  %v138_v44 = vld [vmem:[#allocation4 + $0x258] sm:$0xff]  ;;  %v952_v46 = vpack.c.bf16 %v131_v38, %v127_v37 }
  0x4f   :  { %941 = vmatpush1.bf16.msra.mxu0 %v940_v10  ;;  %v140_v43 = vld [vmem:[#allocation4 + $0x268] sm:$0xff]  ;;  %v142_v45 = vld [vmem:[#allocation4 + $0x278] sm:$0xff]  ;;  %v1080_v47 = vpack.c.bf16 %v133_v41, %v129_v39  ;;  %v135_v49 = vld [vmem:[#allocation4 + $0x240] sm:$0xff] }
  0x50   :  { %1069 = vmatpush1.bf16.msra.mxu1 %v1068_v11  ;;  %943 = vmatprep.subr.bf16.mxu0 %v942_v12  ;;  %v954_v48 = vpack.c.bf16 %v140_v43, %v136_v42  ;;  %v139_v50 = vld [vmem:[#allocation4 + $0x260] sm:$0xff]  ;;  %v137_v51 = vld [vmem:[#allocation4 + $0x250] sm:$0xff]  ;;  %v1082_v52 = vpack.c.bf16 %v142_v45, %v138_v44  ;;  %v144_v54 = vld [vmem:[#allocation4 + $0x288] sm:$0xff] }
  0x51   :  { %1071 = vmatprep.subr.bf16.mxu1 %v1070_v16  ;;  %v141_v53 = vld [vmem:[#allocation4 + $0x270] sm:$0xff]  ;;  %v148_v55 = vld [vmem:[#allocation4 + $0x2a8] sm:$0xff]  ;;  %v146_v56 = vld [vmem:[#allocation4 + $0x298] sm:$0xff]  ;;  %v956_v58 = vpack.c.bf16 %v139_v50, %v135_v49 }
  0x52   :  { %v150_v57 = vld [vmem:[#allocation4 + $0x2b8] sm:$0xff]  ;;  %v1084_v59 = vpack.c.bf16 %v141_v53, %v137_v51  ;;  %v958_v60 = vpack.c.bf16 %v148_v55, %v144_v54  ;;  %v143_v61 = vld [vmem:[#allocation4 + $0x280] sm:$0xff]  ;;  %v145_v63 = vld [vmem:[#allocation4 + $0x290] sm:$0xff] }
  0x53   :  { %945 = vmatpush1.bf16.msra.mxu0 %v944_v22  ;;  %v147_v62 = vld [vmem:[#allocation4 + $0x2a0] sm:$0xff]  ;;  %v1086_v0 = vpack.c.bf16 %v150_v57, %v146_v56  ;;  %v149_v1 = vld [vmem:[#allocation4 + $0x2b0] sm:$0xff]  ;;  %v152_v2 = vld [vmem:[#allocation4 + $0x2c8] sm:$0xff] }
  0x54   :  { %1073 = vmatpush1.bf16.msra.mxu1 %v1072_v23  ;;  %947 = vmatprep.subr.bf16.mxu0 %v946_v24  ;;  %v156_v3 = vld [vmem:[#allocation4 + $0x2e8] sm:$0xff]  ;;  %v154_v4 = vld [vmem:[#allocation4 + $0x2d8] sm:$0xff]  ;;  %v960_v6 = vpack.c.bf16 %v147_v62, %v143_v61  ;;  %v151_v7 = vld [vmem:[#allocation4 + $0x2c0] sm:$0xff]  ;;  %v1088_v8 = vpack.c.bf16 %v149_v1, %v145_v63 }
  0x55   :  { %1075 = vmatprep.subr.bf16.mxu1 %v1074_v28  ;;  %v158_v5 = vld [vmem:[#allocation4 + $0x2f8] sm:$0xff]  ;;  %v962_v9 = vpack.c.bf16 %v156_v3, %v152_v2  ;;  %v155_v10 = vld [vmem:[#allocation4 + $0x2e0] sm:$0xff]  ;;  %v153_v11 = vld [vmem:[#allocation4 + $0x2d0] sm:$0xff] }
  0x56   :  { %v157_v12 = vld [vmem:[#allocation4 + $0x2f0] sm:$0xff]  ;;  %v1090_v13 = vpack.c.bf16 %v158_v5, %v154_v4  ;;  %v160_v14 = vld [vmem:[#allocation4 + $0x308] sm:$0xff]  ;;  %v162_v17 = vld [vmem:[#allocation4 + $0x318] sm:$0xff]  ;;  %v964_v19 = vpack.c.bf16 %v155_v10, %v151_v7 }
  0x57   :  { %949 = vmatpush1.bf16.msra.mxu0 %v948_v34  ;;  %v164_v15 = vld [vmem:[#allocation4 + $0x328] sm:$0xff]  ;;  %v166_v18 = vld [vmem:[#allocation4 + $0x338] sm:$0xff]  ;;  %v1092_v20 = vpack.c.bf16 %v157_v12, %v153_v11  ;;  %v159_v22 = vld [vmem:[#allocation4 + $0x300] sm:$0xff] }
  0x58   :  { %1077 = vmatpush1.bf16.msra.mxu1 %v1076_v35  ;;  %951 = vmatprep.subr.bf16.mxu0 %v950_v36  ;;  %v60_v16 = vld [vmem:[#allocation2 + $0x8] sm:$0xff]  ;;  %v966_v21 = vpack.c.bf16 %v164_v15, %v160_v14  ;;  %v163_v23 = vld [vmem:[#allocation4 + $0x320] sm:$0xff]  ;;  %v161_v24 = vld [vmem:[#allocation4 + $0x310] sm:$0xff]  ;;  %v1094_v25 = vpack.c.bf16 %v166_v18, %v162_v17 }
  0x59   :  { %1079 = vmatprep.subr.bf16.mxu1 %v1078_v40  ;;  %405 = vmatprep.mubr.f32.mxu0 %v60_v16  ;;  %v165_v26 = vld [vmem:[#allocation4 + $0x330] sm:$0xff]  ;;  %v168_v27 = vld [vmem:[#allocation4 + $0x348] sm:$0xff]  ;;  %v170_v29 = vld [vmem:[#allocation4 + $0x358] sm:$0xff]  ;;  %v968_v31 = vpack.c.bf16 %v163_v23, %v159_v22 }
  0x5a   :  { %547 = vmatprep.mubr.f32.mxu1 %v60_v16  ;;  %v172_v28 = vld [vmem:[#allocation4 + $0x368] sm:$0xff]  ;;  %v174_v30 = vld [vmem:[#allocation4 + $0x378] sm:$0xff]  ;;  %v1096_v32 = vpack.c.bf16 %v165_v26, %v161_v24  ;;  %v167_v34 = vld [vmem:[#allocation4 + $0x340] sm:$0xff] }
  0x5b   :  { %953 = vmatpush1.bf16.msra.mxu0 %v952_v46  ;;  %v970_v33 = vpack.c.bf16 %v172_v28, %v168_v27  ;;  %v171_v35 = vld [vmem:[#allocation4 + $0x360] sm:$0xff]  ;;  %v169_v36 = vld [vmem:[#allocation4 + $0x350] sm:$0xff]  ;;  %v1098_v37 = vpack.c.bf16 %v174_v30, %v170_v29  ;;  %v176_v39 = vld [vmem:[#allocation4 + $0x388] sm:$0xff] }
  0x5c   :  { %1081 = vmatpush1.bf16.msra.mxu1 %v1080_v47  ;;  %955 = vmatprep.subr.bf16.mxu0 %v954_v48  ;;  %v173_v38 = vld [vmem:[#allocation4 + $0x370] sm:$0xff]  ;;  %v180_v40 = vld [vmem:[#allocation4 + $0x3a8] sm:$0xff]  ;;  %v178_v41 = vld [vmem:[#allocation4 + $0x398] sm:$0xff]  ;;  %v972_v43 = vpack.c.bf16 %v171_v35, %v167_v34 }
  0x5d   :  { %1083 = vmatprep.subr.bf16.mxu1 %v1082_v52  ;;  %v182_v42 = vld [vmem:[#allocation4 + $0x3b8] sm:$0xff]  ;;  %v1100_v44 = vpack.c.bf16 %v173_v38, %v169_v36  ;;  %v974_v45 = vpack.c.bf16 %v180_v40, %v176_v39  ;;  %v175_v46 = vld [vmem:[#allocation4 + $0x380] sm:$0xff]  ;;  %v177_v48 = vld [vmem:[#allocation4 + $0x390] sm:$0xff] }
  0x5e   :  { %v179_v47 = vld [vmem:[#allocation4 + $0x3a0] sm:$0xff]  ;;  %v1102_v49 = vpack.c.bf16 %v182_v42, %v178_v41  ;;  %v181_v50 = vld [vmem:[#allocation4 + $0x3b0] sm:$0xff]  ;;  %v184_v51 = vld [vmem:[#allocation4 + $0x3c8] sm:$0xff] }
  0x5f   :  { %957 = vmatpush1.bf16.msra.mxu0 %v956_v58  ;;  %v188_v52 = vld [vmem:[#allocation4 + $0x3e8] sm:$0xff]  ;;  %v186_v53 = vld [vmem:[#allocation4 + $0x3d8] sm:$0xff]  ;;  %v976_v55 = vpack.c.bf16 %v179_v47, %v175_v46  ;;  %v1104_v56 = vpack.c.bf16 %v181_v50, %v177_v48  ;;  %v183_v58 = vld [vmem:[#allocation4 + $0x3c0] sm:$0xff] }
  0x60   :  { %1085 = vmatpush1.bf16.msra.mxu1 %v1084_v59  ;;  %959 = vmatprep.subr.bf16.mxu0 %v958_v60  ;;  %v190_v54 = vld [vmem:[#allocation4 + $0x3f8] sm:$0xff]  ;;  %v978_v57 = vpack.c.bf16 %v188_v52, %v184_v51  ;;  %v187_v59 = vld [vmem:[#allocation4 + $0x3e0] sm:$0xff]  ;;  %v185_v60 = vld [vmem:[#allocation4 + $0x3d0] sm:$0xff] }
  0x61   :  { %1087 = vmatprep.subr.bf16.mxu1 %v1086_v0  ;;  %v1106_v61 = vpack.c.bf16 %v190_v54, %v186_v53  ;;  %v189_v62 = vld [vmem:[#allocation4 + $0x3f0] sm:$0xff]  ;;  %v192_v63 = vld [vmem:[#allocation4 + $0x408] sm:$0xff]  ;;  %v194_v1 = vld [vmem:[#allocation4 + $0x418] sm:$0xff]  ;;  %v980_v3 = vpack.c.bf16 %v187_v59, %v183_v58 }
  0x62   :  { %v196_v0 = vld [vmem:[#allocation4 + $0x428] sm:$0xff]  ;;  %v198_v2 = vld [vmem:[#allocation4 + $0x438] sm:$0xff]  ;;  %v1108_v4 = vpack.c.bf16 %v189_v62, %v185_v60  ;;  %v195_v7 = vld [vmem:[#allocation4 + $0x420] sm:$0xff] }
  0x63   :  { %961 = vmatpush1.bf16.msra.mxu0 %v960_v6  ;;  %v982_v5 = vpack.c.bf16 %v196_v0, %v192_v63  ;;  %v191_v6 = vld [vmem:[#allocation4 + $0x400] sm:$0xff]  ;;  %v197_v10 = vld [vmem:[#allocation4 + $0x430] sm:$0xff]  ;;  %v200_v11 = vld [vmem:[#allocation4 + $0x448] sm:$0xff] }
  0x64   :  { %1089 = vmatpush1.bf16.msra.mxu1 %v1088_v8  ;;  %963 = vmatprep.subr.bf16.mxu0 %v962_v9  ;;  %v193_v8 = vld [vmem:[#allocation4 + $0x410] sm:$0xff]  ;;  %v1110_v9 = vpack.c.bf16 %v198_v2, %v194_v1  ;;  %v204_v12 = vld [vmem:[#allocation4 + $0x468] sm:$0xff]  ;;  %v206_v14 = vld [vmem:[#allocation4 + $0x478] sm:$0xff]  ;;  %v984_v16 = vpack.c.bf16 %v195_v7, %v191_v6 }
  0x65   :  { %1091 = vmatprep.subr.bf16.mxu1 %v1090_v13  ;;  %v202_v13 = vld [vmem:[#allocation4 + $0x458] sm:$0xff]  ;;  %v59_v15 = vld [vmem:[#allocation2] sm:$0xff]  ;;  %v1112_v17 = vpack.c.bf16 %v197_v10, %v193_v8  ;;  %v986_v18 = vpack.c.bf16 %v204_v12, %v200_v11  ;;  %v205_v23 = vld [vmem:[#allocation4 + $0x470] sm:$0xff] }
  0x66   :  { %v1114_v22 = vpack.c.bf16 %v206_v14, %v202_v13  ;;  %v208_v24 = vld [vmem:[#allocation4 + $0x488] sm:$0xff]  ;;  %v210_v26 = vld [vmem:[#allocation4 + $0x498] sm:$0xff]  ;;  %v213_v35 = vld [vmem:[#allocation4 + $0x4b0] sm:$0xff] }
  0x67   :  { %965 = vmatpush1.bf16.msra.mxu0 %v964_v19  ;;  %v199_v19 = vld [vmem:[#allocation4 + $0x440] sm:$0xff]  ;;  %v214_v27 = vld [vmem:[#allocation4 + $0x4b8] sm:$0xff]  ;;  %v216_v36 = vld [vmem:[#allocation4 + $0x4c8] sm:$0xff] }
  0x68   :  { %1093 = vmatpush1.bf16.msra.mxu1 %v1092_v20  ;;  %967 = vmatprep.subr.bf16.mxu0 %v966_v21  ;;  %v203_v20 = vld [vmem:[#allocation4 + $0x460] sm:$0xff]  ;;  %v201_v21 = vld [vmem:[#allocation4 + $0x450] sm:$0xff]  ;;  %v1118_v34 = vpack.c.bf16 %v214_v27, %v210_v26  ;;  %v218_v38 = vld [vmem:[#allocation4 + $0x4d8] sm:$0xff] }
  0x69   :  { %1095 = vmatprep.subr.bf16.mxu1 %v1094_v25  ;;  %v212_v25 = vld [vmem:[#allocation4 + $0x4a8] sm:$0xff]  ;;  %v988_v28 = vpack.c.bf16 %v203_v20, %v199_v19  ;;  %v1116_v29 = vpack.c.bf16 %v205_v23, %v201_v21  ;;  %v222_v39 = vld [vmem:[#allocation4 + $0x4f8] sm:$0xff]  ;;  %v221_v47 = vld [vmem:[#allocation4 + $0x4f0] sm:$0xff] }
  0x6a   :  { %v990_v30 = vpack.c.bf16 %v212_v25, %v208_v24  ;;  %v1122_v46 = vpack.c.bf16 %v222_v39, %v218_v38  ;;  %v224_v48 = vld [vmem:[#allocation4 + $0x508] sm:$0xff]  ;;  %v226_v50 = vld [vmem:[#allocation4 + $0x518] sm:$0xff]  ;;  %v229_v59 = vld [vmem:[#allocation4 + $0x530] sm:$0xff] }
  0x6b   :  { %969 = vmatpush1.bf16.msra.mxu0 %v968_v31  ;;  %v207_v31 = vld [vmem:[#allocation4 + $0x480] sm:$0xff]  ;;  %v230_v51 = vld [vmem:[#allocation4 + $0x538] sm:$0xff]  ;;  %v232_v60 = vld [vmem:[#allocation4 + $0x548] sm:$0xff] }
  0x6c   :  { %1097 = vmatpush1.bf16.msra.mxu1 %v1096_v32  ;;  %971 = vmatprep.subr.bf16.mxu0 %v970_v33  ;;  %v211_v32 = vld [vmem:[#allocation4 + $0x4a0] sm:$0xff]  ;;  %v209_v33 = vld [vmem:[#allocation4 + $0x490] sm:$0xff]  ;;  %v1126_v58 = vpack.c.bf16 %v230_v51, %v226_v50  ;;  %v234_v62 = vld [vmem:[#allocation4 + $0x558] sm:$0xff] }
  0x6d   :  { %1099 = vmatprep.subr.bf16.mxu1 %v1098_v37  ;;  %v220_v37 = vld [vmem:[#allocation4 + $0x4e8] sm:$0xff]  ;;  %v992_v40 = vpack.c.bf16 %v211_v32, %v207_v31  ;;  %v1120_v41 = vpack.c.bf16 %v213_v35, %v209_v33  ;;  %v238_v63 = vld [vmem:[#allocation4 + $0x578] sm:$0xff]  ;;  %v237_v7 = vld [vmem:[#allocation4 + $0x570] sm:$0xff] }
  0x6e   :  { %v994_v42 = vpack.c.bf16 %v220_v37, %v216_v36  ;;  %v1130_v6 = vpack.c.bf16 %v238_v63, %v234_v62  ;;  %v240_v8 = vld [vmem:[#allocation4 + $0x588] sm:$0xff]  ;;  %v242_v10 = vld [vmem:[#allocation4 + $0x598] sm:$0xff]  ;;  %v239_v13 = vld [vmem:[#allocation4 + $0x580] sm:$0xff] }
  0x6f   :  { %973 = vmatpush1.bf16.msra.mxu0 %v972_v43  ;;  %v215_v43 = vld [vmem:[#allocation4 + $0x4c0] sm:$0xff]  ;;  %v246_v11 = vld [vmem:[#allocation4 + $0x5b8] sm:$0xff]  ;;  %v248_v20 = vld [vmem:[#allocation4 + $0x5c8] sm:$0xff] }
  0x70   :  { %1101 = vmatpush1.bf16.msra.mxu1 %v1100_v44  ;;  %975 = vmatprep.subr.bf16.mxu0 %v974_v45  ;;  %v219_v44 = vld [vmem:[#allocation4 + $0x4e0] sm:$0xff]  ;;  %v217_v45 = vld [vmem:[#allocation4 + $0x4d0] sm:$0xff]  ;;  %v1134_v19 = vpack.c.bf16 %v246_v11, %v242_v10  ;;  %v252_v21 = vld [vmem:[#allocation4 + $0x5e8] sm:$0xff] }
  0x71   :  { %1103 = vmatprep.subr.bf16.mxu1 %v1102_v49  ;;  %v228_v49 = vld [vmem:[#allocation4 + $0x528] sm:$0xff]  ;;  %v996_v52 = vpack.c.bf16 %v219_v44, %v215_v43  ;;  %v1124_v53 = vpack.c.bf16 %v221_v47, %v217_v45  ;;  %v250_v23 = vld [vmem:[#allocation4 + $0x5d8] sm:$0xff]  ;;  %v1010_v27 = vpack.c.bf16 %v252_v21, %v248_v20  ;;  %v253_v32 = vld [vmem:[#allocation4 + $0x5f0] sm:$0xff] }
  0x72   :  { %v998_v54 = vpack.c.bf16 %v228_v49, %v224_v48  ;;  %v254_v24 = vld [vmem:[#allocation4 + $0x5f8] sm:$0xff]  ;;  %v256_v33 = vld [vmem:[#allocation4 + $0x608] sm:$0xff]  ;;  %v261_v44 = vld [vmem:[#allocation4 + $0x630] sm:$0xff] }
  0x73   :  { %977 = vmatpush1.bf16.msra.mxu0 %v976_v55  ;;  %v223_v55 = vld [vmem:[#allocation4 + $0x500] sm:$0xff]  ;;  %v1138_v31 = vpack.c.bf16 %v254_v24, %v250_v23  ;;  %v258_v35 = vld [vmem:[#allocation4 + $0x618] sm:$0xff]  ;;  %v264_v45 = vld [vmem:[#allocation4 + $0x648] sm:$0xff] }
  0x74   :  { %1105 = vmatpush1.bf16.msra.mxu1 %v1104_v56  ;;  %979 = vmatprep.subr.bf16.mxu0 %v978_v57  ;;  %v227_v56 = vld [vmem:[#allocation4 + $0x520] sm:$0xff]  ;;  %v225_v57 = vld [vmem:[#allocation4 + $0x510] sm:$0xff]  ;;  %v262_v36 = vld [vmem:[#allocation4 + $0x638] sm:$0xff] }
  0x75   :  { %1107 = vmatprep.subr.bf16.mxu1 %v1106_v61  ;;  %v236_v61 = vld [vmem:[#allocation4 + $0x568] sm:$0xff]  ;;  %v1000_v0 = vpack.c.bf16 %v227_v56, %v223_v55  ;;  %v1128_v1 = vpack.c.bf16 %v229_v59, %v225_v57  ;;  %v1142_v43 = vpack.c.bf16 %v262_v36, %v258_v35  ;;  %v266_v47 = vld [vmem:[#allocation4 + $0x658] sm:$0xff]  ;;  %v269_v56 = vld [vmem:[#allocation4 + $0x670] sm:$0xff] }
  0x76   :  { %v1002_v2 = vpack.c.bf16 %v236_v61, %v232_v60  ;;  %v270_v48 = vld [vmem:[#allocation4 + $0x678] sm:$0xff]  ;;  %v272_v57 = vld [vmem:[#allocation4 + $0x688] sm:$0xff]  ;;  %v287_v24 = vld [vmem:[#allocation4 + $0x700] sm:$0xff] }
  0x77   :  { %981 = vmatpush1.bf16.msra.mxu0 %v980_v3  ;;  %v231_v3 = vld [vmem:[#allocation4 + $0x540] sm:$0xff]  ;;  %v1146_v55 = vpack.c.bf16 %v270_v48, %v266_v47  ;;  %v274_v59 = vld [vmem:[#allocation4 + $0x698] sm:$0xff] }
  0x78   :  { %1109 = vmatpush1.bf16.msra.mxu1 %v1108_v4  ;;  %983 = vmatprep.subr.bf16.mxu0 %v982_v5  ;;  %v235_v4 = vld [vmem:[#allocation4 + $0x560] sm:$0xff]  ;;  %v233_v5 = vld [vmem:[#allocation4 + $0x550] sm:$0xff]  ;;  %v278_v60 = vld [vmem:[#allocation4 + $0x6b8] sm:$0xff] }
  0x79   :  { %1111 = vmatprep.subr.bf16.mxu1 %v1110_v9  ;;  %v244_v9 = vld [vmem:[#allocation4 + $0x5a8] sm:$0xff]  ;;  %v1004_v12 = vpack.c.bf16 %v235_v4, %v231_v3  ;;  %v1132_v14 = vpack.c.bf16 %v237_v7, %v233_v5  ;;  %v1150_v3 = vpack.c.bf16 %v278_v60, %v274_v59  ;;  %v277_v4 = vld [vmem:[#allocation4 + $0x6b0] sm:$0xff]  ;;  %v282_v7 = vld [vmem:[#allocation4 + $0x6d8] sm:$0xff] }
  0x7a   :  { %406 = vmatmul.mubr.f32.vlgmr.msra.gmra.mrb[0].mxu0 %v59_v15  ;;  %v280_v5 = vld [vmem:[#allocation4 + $0x6c8] sm:$0xff]  ;;  %v294_v20 = vld [vmem:[#allocation4 + $0x738] sm:$0xff]  ;;  %v295_v36 = vld [vmem:[#allocation4 + $0x740] sm:$0xff] }
  0x7b   :  { %985 = vmatpush1.bf16.msra.mxu0 %v984_v16  ;;  %548 = vmatmul.mubr.f32.vlgmr.msra.gmra.mrb[0].mxu1 %v59_v15  ;;  %v1006_v15 = vpack.c.bf16 %v244_v9, %v240_v8  ;;  %v243_v16 = vld [vmem:[#allocation4 + $0x5a0] sm:$0xff]  ;;  %v286_v8 = vld [vmem:[#allocation4 + $0x6f8] sm:$0xff] }
  0x7c   :  { %1113 = vmatpush1.bf16.msra.mxu1 %v1112_v17  ;;  %987 = vmatprep.subr.bf16.mxu0 %v986_v18  ;;  %v241_v17 = vld [vmem:[#allocation4 + $0x590] sm:$0xff]  ;;  %v1008_v25 = vpack.c.bf16 %v243_v16, %v239_v13  ;;  %v283_v13 = vld [vmem:[#allocation4 + $0x6e0] sm:$0xff] }
  0x7d   :  { %1115 = vmatprep.subr.bf16.mxu1 %v1114_v22  ;;  %v245_v18 = vld [vmem:[#allocation4 + $0x5b0] sm:$0xff]  ;;  %v62_v22 = vld [vmem:[#allocation2 + $0x18] sm:$0xff]  ;;  %v303_v48 = vld [vmem:[#allocation4 + $0x780] sm:$0xff] }
  0x7e   :  { %476 = vmatprep.mubr.f32.mxu0 %v62_v22  ;;  %618 = vmatprep.mubr.f32.mxu1 %v62_v22  ;;  %v1136_v26 = vpack.c.bf16 %v245_v18, %v241_v17  ;;  %v285_v16 = vld [vmem:[#allocation4 + $0x6f0] sm:$0xff]  ;;  %v288_v17 = vld [vmem:[#allocation4 + $0x708] sm:$0xff]  ;;  %v311_v60 = vld [vmem:[#allocation4 + $0x7c0] sm:$0xff] }
  0x7f   :  { %989 = vmatpush1.bf16.msra.mxu0 %v988_v28  ;;  %v247_v28 = vld [vmem:[#allocation4 + $0x5c0] sm:$0xff]  ;;  %v292_v18 = vld [vmem:[#allocation4 + $0x728] sm:$0xff] }
  0x80   :  { %1117 = vmatpush1.bf16.msra.mxu1 %v1116_v29  ;;  %991 = vmatprep.subr.bf16.mxu0 %v990_v30  ;;  %v251_v29 = vld [vmem:[#allocation4 + $0x5e0] sm:$0xff]  ;;  %v249_v30 = vld [vmem:[#allocation4 + $0x5d0] sm:$0xff]  ;;  %v1030_v23 = vpack.c.bf16 %v292_v18, %v288_v17 }
  0x81   :  { %1119 = vmatprep.subr.bf16.mxu1 %v1118_v34  ;;  %v260_v34 = vld [vmem:[#allocation4 + $0x628] sm:$0xff]  ;;  %v1012_v37 = vpack.c.bf16 %v251_v29, %v247_v28  ;;  %v1140_v38 = vpack.c.bf16 %v253_v32, %v249_v30  ;;  %v293_v28 = vld [vmem:[#allocation4 + $0x730] sm:$0xff]  ;;  %v302_v32 = vld [vmem:[#allocation4 + $0x778] sm:$0xff] }
  0x82   :  { %v1014_v39 = vpack.c.bf16 %v260_v34, %v256_v33  ;;  %v296_v29 = vld [vmem:[#allocation4 + $0x748] sm:$0xff]  ;;  %v61_v17 = vld [vmem:[#allocation2 + $0x10] sm:$0xff] }
  0x83   :  { %993 = vmatpush1.bf16.msra.mxu0 %v992_v40  ;;  %v255_v40 = vld [vmem:[#allocation4 + $0x600] sm:$0xff]  ;;  %v300_v30 = vld [vmem:[#allocation4 + $0x768] sm:$0xff] }
  0x84   :  { %1121 = vmatpush1.bf16.msra.mxu1 %v1120_v41  ;;  %995 = vmatprep.subr.bf16.mxu0 %v994_v42  ;;  %v259_v41 = vld [vmem:[#allocation4 + $0x620] sm:$0xff]  ;;  %v257_v42 = vld [vmem:[#allocation4 + $0x610] sm:$0xff]  ;;  %v1034_v35 = vpack.c.bf16 %v300_v30, %v296_v29  ;;  %v682_v29 = vld [vmem:[#allocation6 + $0x1a8] sm:$0xff] }
  0x85   :  { %1123 = vmatprep.subr.bf16.mxu1 %v1122_v46  ;;  %v268_v46 = vld [vmem:[#allocation4 + $0x668] sm:$0xff]  ;;  %v1016_v49 = vpack.c.bf16 %v259_v41, %v255_v40  ;;  %v1144_v50 = vpack.c.bf16 %v261_v44, %v257_v42  ;;  %v301_v40 = vld [vmem:[#allocation4 + $0x770] sm:$0xff]  ;;  %v310_v44 = vld [vmem:[#allocation4 + $0x7b8] sm:$0xff] }
  0x86   :  { %v1018_v51 = vpack.c.bf16 %v268_v46, %v264_v45  ;;  %v304_v41 = vld [vmem:[#allocation4 + $0x788] sm:$0xff] }
  0x87   :  { %997 = vmatpush1.bf16.msra.mxu0 %v996_v52  ;;  %v263_v52 = vld [vmem:[#allocation4 + $0x640] sm:$0xff]  ;;  %v308_v42 = vld [vmem:[#allocation4 + $0x7a8] sm:$0xff] }
  0x88   :  { %1125 = vmatpush1.bf16.msra.mxu1 %v1124_v53  ;;  %999 = vmatprep.subr.bf16.mxu0 %v998_v54  ;;  %v267_v53 = vld [vmem:[#allocation4 + $0x660] sm:$0xff]  ;;  %v265_v54 = vld [vmem:[#allocation4 + $0x650] sm:$0xff]  ;;  %v1038_v47 = vpack.c.bf16 %v308_v42, %v304_v41  ;;  %v684_v41 = vld [vmem:[#allocation6 + $0x1b8] sm:$0xff] }
  0x89   :  { %1127 = vmatprep.subr.bf16.mxu1 %v1126_v58  ;;  %v276_v58 = vld [vmem:[#allocation4 + $0x6a8] sm:$0xff]  ;;  %v1020_v61 = vpack.c.bf16 %v267_v53, %v263_v52  ;;  %v1148_v62 = vpack.c.bf16 %v269_v56, %v265_v54  ;;  %v309_v52 = vld [vmem:[#allocation4 + $0x7b0] sm:$0xff]  ;;  %v318_v56 = vld [vmem:[#allocation4 + $0x7f8] sm:$0xff] }
  0x8a   :  { %v1022_v63 = vpack.c.bf16 %v276_v58, %v272_v57  ;;  %v312_v53 = vld [vmem:[#allocation4 + $0x7c8] sm:$0xff] }
  0x8b   :  { %1001 = vmatpush1.bf16.msra.mxu0 %v1000_v0  ;;  %v271_v0 = vld [vmem:[#allocation4 + $0x680] sm:$0xff]  ;;  %v316_v54 = vld [vmem:[#allocation4 + $0x7e8] sm:$0xff] }
  0x8c   :  { %1129 = vmatpush1.bf16.msra.mxu1 %v1128_v1  ;;  %1003 = vmatprep.subr.bf16.mxu0 %v1002_v2  ;;  %v275_v1 = vld [vmem:[#allocation4 + $0x6a0] sm:$0xff]  ;;  %v273_v2 = vld [vmem:[#allocation4 + $0x690] sm:$0xff]  ;;  %v1042_v59 = vpack.c.bf16 %v316_v54, %v312_v53  ;;  %v686_v53 = vld [vmem:[#allocation6 + $0x1c8] sm:$0xff] }
  0x8d   :  { %1131 = vmatprep.subr.bf16.mxu1 %v1130_v6  ;;  %v284_v6 = vld [vmem:[#allocation4 + $0x6e8] sm:$0xff]  ;;  %v1024_v9 = vpack.c.bf16 %v275_v1, %v271_v0  ;;  %v1152_v10 = vpack.c.bf16 %v277_v4, %v273_v2  ;;  %v317_v0 = vld [vmem:[#allocation4 + $0x7f0] sm:$0xff]  ;;  %v645_v1 = vld [vmem:[#allocation6 + $0x80] sm:$0xff] }
  0x8e   :  { %v1026_v11 = vpack.c.bf16 %v284_v6, %v280_v5  ;;  %v646_v2 = vld [vmem:[#allocation6 + $0x88] sm:$0xff] }
  0x8f   :  { %1005 = vmatpush1.bf16.msra.mxu0 %v1004_v12  ;;  %v279_v12 = vld [vmem:[#allocation4 + $0x6c0] sm:$0xff]  ;;  %v678_v4 = vld [vmem:[#allocation6 + $0x188] sm:$0xff] }
  0x90   :  { %1133 = vmatpush1.bf16.msra.mxu1 %v1132_v14  ;;  %1007 = vmatprep.subr.bf16.mxu0 %v1006_v15  ;;  %v281_v14 = vld [vmem:[#allocation4 + $0x6d0] sm:$0xff]  ;;  %v1154_v15 = vpack.c.bf16 %v286_v8, %v282_v7  ;;  %v1028_v21 = vpack.c.bf16 %v283_v13, %v279_v12  ;;  %v1174_v7 = vpack.c.bf16 %v646_v2, %v645_v1  ;;  %v629_v8 = vld [vmem:[#allocation6] sm:$0xff]  ;;  %v662_v12 = vld [vmem:[#allocation6 + $0x108] sm:$0xff] }
  0x91   :  { %1135 = vmatprep.subr.bf16.mxu1 %v1134_v19  ;;  %v290_v19 = vld [vmem:[#allocation4 + $0x718] sm:$0xff]  ;;  %v1156_v22 = vpack.c.bf16 %v285_v16, %v281_v14  ;;  %v647_v13 = vld [vmem:[#allocation6 + $0x90] sm:$0xff] }
  0x92   :  { %v648_v14 = vld [vmem:[#allocation6 + $0x98] sm:$0xff] }
  0x93   :  { %1009 = vmatpush1.bf16.msra.mxu0 %v1008_v25  ;;  %v291_v25 = vld [vmem:[#allocation4 + $0x720] sm:$0xff]  ;;  %v680_v16 = vld [vmem:[#allocation6 + $0x198] sm:$0xff] }
  0x94   :  { %1137 = vmatpush1.bf16.msra.mxu1 %v1136_v26  ;;  %1011 = vmatprep.subr.bf16.mxu0 %v1010_v27  ;;  %v289_v26 = vld [vmem:[#allocation4 + $0x710] sm:$0xff]  ;;  %v1158_v27 = vpack.c.bf16 %v294_v20, %v290_v19  ;;  %v1032_v33 = vpack.c.bf16 %v291_v25, %v287_v24  ;;  %v1178_v20 = vpack.c.bf16 %v648_v14, %v647_v13  ;;  %v664_v25 = vld [vmem:[#allocation6 + $0x118] sm:$0xff]  ;;  %v690_v13 = vld [vmem:[#allocation6 + $0x1e8] sm:$0xff] }
  0x95   :  { %1139 = vmatprep.subr.bf16.mxu1 %v1138_v31  ;;  %v298_v31 = vld [vmem:[#allocation4 + $0x758] sm:$0xff]  ;;  %v1160_v34 = vpack.c.bf16 %v293_v28, %v289_v26  ;;  %v649_v26 = vld [vmem:[#allocation6 + $0xa0] sm:$0xff] }
  0x96   :  { %v681_v28 = vld [vmem:[#allocation6 + $0x1a0] sm:$0xff]  ;;  %v688_v1 = vld [vmem:[#allocation6 + $0x1d8] sm:$0xff] }
  0x97   :  { %1013 = vmatpush1.bf16.msra.mxu0 %v1012_v37  ;;  %v299_v37 = vld [vmem:[#allocation4 + $0x760] sm:$0xff] }
  0x98   :  { %1141 = vmatpush1.bf16.msra.mxu1 %v1140_v38  ;;  %1015 = vmatprep.subr.bf16.mxu0 %v1014_v39  ;;  %v297_v38 = vld [vmem:[#allocation4 + $0x750] sm:$0xff]  ;;  %v1162_v39 = vpack.c.bf16 %v302_v32, %v298_v31  ;;  %v1036_v45 = vpack.c.bf16 %v299_v37, %v295_v36  ;;  %v1214_v36 = vpack.c.bf16 %v682_v29, %v681_v28  ;;  %v666_v37 = vld [vmem:[#allocation6 + $0x128] sm:$0xff]  ;;  %v692_v28 = vld [vmem:[#allocation6 + $0x1f8] sm:$0xff] }
  0x99   :  { %1143 = vmatprep.subr.bf16.mxu1 %v1142_v43  ;;  %v306_v43 = vld [vmem:[#allocation4 + $0x798] sm:$0xff]  ;;  %v1164_v46 = vpack.c.bf16 %v301_v40, %v297_v38  ;;  %v651_v38 = vld [vmem:[#allocation6 + $0xb0] sm:$0xff] }
  0x9a   :  { %v683_v40 = vld [vmem:[#allocation6 + $0x1b0] sm:$0xff] }
  0x9b   :  { %1017 = vmatpush1.bf16.msra.mxu0 %v1016_v49  ;;  %v307_v49 = vld [vmem:[#allocation4 + $0x7a0] sm:$0xff]  ;;  %v643_v29 = vld [vmem:[#allocation6 + $0x70] sm:$0xff] }
  0x9c   :  { %1145 = vmatpush1.bf16.msra.mxu1 %v1144_v50  ;;  %1019 = vmatprep.subr.bf16.mxu0 %v1018_v51  ;;  %v305_v50 = vld [vmem:[#allocation4 + $0x790] sm:$0xff]  ;;  %v1166_v51 = vpack.c.bf16 %v310_v44, %v306_v43  ;;  %v1040_v57 = vpack.c.bf16 %v307_v49, %v303_v48  ;;  %v1218_v48 = vpack.c.bf16 %v684_v41, %v683_v40  ;;  %v668_v49 = vld [vmem:[#allocation6 + $0x138] sm:$0xff] }
  0x9d   :  { %1147 = vmatprep.subr.bf16.mxu1 %v1146_v55  ;;  %v314_v55 = vld [vmem:[#allocation4 + $0x7d8] sm:$0xff]  ;;  %v1168_v58 = vpack.c.bf16 %v309_v52, %v305_v50  ;;  %v653_v50 = vld [vmem:[#allocation6 + $0xc0] sm:$0xff] }
  0x9e   :  { %v685_v52 = vld [vmem:[#allocation6 + $0x1c0] sm:$0xff] }
  0x9f   :  { %1021 = vmatpush1.bf16.msra.mxu0 %v1020_v61  ;;  %v315_v61 = vld [vmem:[#allocation4 + $0x7e0] sm:$0xff] }
  0xa0   :  { %1149 = vmatpush1.bf16.msra.mxu1 %v1148_v62  ;;  %1023 = vmatprep.subr.bf16.mxu0 %v1022_v63  ;;  %v313_v62 = vld [vmem:[#allocation4 + $0x7d0] sm:$0xff]  ;;  %v1170_v63 = vpack.c.bf16 %v318_v56, %v314_v55  ;;  %v1044_v5 = vpack.c.bf16 %v315_v61, %v311_v60  ;;  %v1222_v60 = vpack.c.bf16 %v686_v53, %v685_v52  ;;  %v670_v61 = vld [vmem:[#allocation6 + $0x148] sm:$0xff] }
  0xa1   :  { %1151 = vmatprep.subr.bf16.mxu1 %v1150_v3  ;;  %v677_v3 = vld [vmem:[#allocation6 + $0x180] sm:$0xff]  ;;  %v1172_v6 = vpack.c.bf16 %v317_v0, %v313_v62  ;;  %v655_v62 = vld [vmem:[#allocation6 + $0xd0] sm:$0xff] }
  0xa2   :  { %v687_v0 = vld [vmem:[#allocation6 + $0x1d0] sm:$0xff] }
  0xa3   :  { %1025 = vmatpush1.bf16.msra.mxu0 %v1024_v9  ;;  %v630_v9 = vld [vmem:[#allocation6 + $0x8] sm:$0xff] }
  0xa4   :  { %1153 = vmatpush1.bf16.msra.mxu1 %v1152_v10  ;;  %1027 = vmatprep.subr.bf16.mxu0 %v1026_v11  ;;  %v661_v10 = vld [vmem:[#allocation6 + $0x100] sm:$0xff]  ;;  %v1206_v11 = vpack.c.bf16 %v678_v4, %v677_v3  ;;  %v1176_v18 = vpack.c.bf16 %v630_v9, %v629_v8  ;;  %v1226_v8 = vpack.c.bf16 %v688_v1, %v687_v0  ;;  %v672_v9 = vld [vmem:[#allocation6 + $0x158] sm:$0xff] }
  0xa5   :  { %1155 = vmatprep.subr.bf16.mxu1 %v1154_v15  ;;  %v679_v15 = vld [vmem:[#allocation6 + $0x190] sm:$0xff]  ;;  %v1208_v19 = vpack.c.bf16 %v662_v12, %v661_v10  ;;  %v657_v10 = vld [vmem:[#allocation6 + $0xe0] sm:$0xff] }
  0xa6   :  { %v1210_v24 = vpack.c.bf16 %v680_v16, %v679_v15  ;;  %v689_v12 = vld [vmem:[#allocation6 + $0x1e0] sm:$0xff] }
  0xa7   :  { %1029 = vmatpush1.bf16.msra.mxu0 %v1028_v21  ;;  %v631_v21 = vld [vmem:[#allocation6 + $0x10] sm:$0xff] }
  0xa8   :  { %1157 = vmatpush1.bf16.msra.mxu1 %v1156_v22  ;;  %1031 = vmatprep.subr.bf16.mxu0 %v1030_v23  ;;  %v632_v22 = vld [vmem:[#allocation6 + $0x18] sm:$0xff]  ;;  %v663_v23 = vld [vmem:[#allocation6 + $0x110] sm:$0xff] }
  0xa9   :  { %1159 = vmatprep.subr.bf16.mxu1 %v1158_v27  ;;  %v650_v27 = vld [vmem:[#allocation6 + $0xa8] sm:$0xff]  ;;  %v1180_v30 = vpack.c.bf16 %v632_v22, %v631_v21  ;;  %v1212_v31 = vpack.c.bf16 %v664_v25, %v663_v23  ;;  %v660_v25 = vld [vmem:[#allocation6 + $0xf8] sm:$0xff] }
  0xaa   :  { %v1182_v32 = vpack.c.bf16 %v650_v27, %v649_v26  ;;  %v674_v22 = vld [vmem:[#allocation6 + $0x168] sm:$0xff]  ;;  %v691_v26 = vld [vmem:[#allocation6 + $0x1f0] sm:$0xff] }
  0xab   :  { %1033 = vmatpush1.bf16.msra.mxu0 %v1032_v33  ;;  %v633_v33 = vld [vmem:[#allocation6 + $0x20] sm:$0xff] }
  0xac   :  { %1161 = vmatpush1.bf16.msra.mxu1 %v1160_v34  ;;  %1035 = vmatprep.subr.bf16.mxu0 %v1034_v35  ;;  %v634_v34 = vld [vmem:[#allocation6 + $0x28] sm:$0xff]  ;;  %v665_v35 = vld [vmem:[#allocation6 + $0x120] sm:$0xff] }
  0xad   :  { %1163 = vmatprep.subr.bf16.mxu1 %v1162_v39  ;;  %v652_v39 = vld [vmem:[#allocation6 + $0xb8] sm:$0xff]  ;;  %v1184_v42 = vpack.c.bf16 %v634_v34, %v633_v33  ;;  %v1216_v43 = vpack.c.bf16 %v666_v37, %v665_v35  ;;  %v675_v33 = vld [vmem:[#allocation6 + $0x170] sm:$0xff] }
  0xae   :  { %v1186_v44 = vpack.c.bf16 %v652_v39, %v651_v38  ;;  %v676_v34 = vld [vmem:[#allocation6 + $0x178] sm:$0xff]  ;;  %v319_v39 = vld [vmem:[%s1407_s2] sm:$0xf] }
  0xaf   :  { %1037 = vmatpush1.bf16.msra.mxu0 %v1036_v45  ;;  %v635_v45 = vld [vmem:[#allocation6 + $0x30] sm:$0xff]  ;;  %v1236_v35 = vpack.c.bf16 %v676_v34, %v675_v33 }
  0xb0   :  { %1165 = vmatpush1.bf16.msra.mxu1 %v1164_v46  ;;  %1039 = vmatprep.subr.bf16.mxu0 %v1038_v47  ;;  %v636_v46 = vld [vmem:[#allocation6 + $0x38] sm:$0xff]  ;;  %v667_v47 = vld [vmem:[#allocation6 + $0x130] sm:$0xff] }
  0xb1   :  { %1167 = vmatprep.subr.bf16.mxu1 %v1166_v51  ;;  %v654_v51 = vld [vmem:[#allocation6 + $0xc8] sm:$0xff]  ;;  %v1188_v54 = vpack.c.bf16 %v636_v46, %v635_v45  ;;  %v1220_v55 = vpack.c.bf16 %v668_v49, %v667_v47 }
  0xb2   :  { %v1190_v56 = vpack.c.bf16 %v654_v51, %v653_v50 }
  0xb3   :  { %1041 = vmatpush1.bf16.msra.mxu0 %v1040_v57  ;;  %v637_v57 = vld [vmem:[#allocation6 + $0x40] sm:$0xff] }
  0xb4   :  { %1169 = vmatpush1.bf16.msra.mxu1 %v1168_v58  ;;  %1043 = vmatprep.subr.bf16.mxu0 %v1042_v59  ;;  %v638_v58 = vld [vmem:[#allocation6 + $0x48] sm:$0xff]  ;;  %v669_v59 = vld [vmem:[#allocation6 + $0x140] sm:$0xff] }
  0xb5   :  { %1171 = vmatprep.subr.bf16.mxu1 %v1170_v63  ;;  %v656_v63 = vld [vmem:[#allocation6 + $0xd8] sm:$0xff]  ;;  %v1192_v2 = vpack.c.bf16 %v638_v58, %v637_v57  ;;  %v1224_v3 = vpack.c.bf16 %v670_v61, %v669_v59  ;;  %v847_v61 = vld [vmem:[%s1409_s4] ss:$0 sm:$0xff] }
  0xb6   :  { %v1194_v4 = vpack.c.bf16 %v656_v63, %v655_v62 }
  0xb7   :  { %1045 = vmatpush1.bf16.msra.mxu0 %v1044_v5  ;;  %v639_v5 = vld [vmem:[#allocation6 + $0x50] sm:$0xff] }
  0xb8   :  { %1173 = vmatpush1.bf16.msra.mxu1 %v1172_v6  ;;  %1175 = vmatprep.subr.bf16.mxu0 %v1174_v7  ;;  %v640_v6 = vld [vmem:[#allocation6 + $0x58] sm:$0xff]  ;;  %v671_v7 = vld [vmem:[#allocation6 + $0x150] sm:$0xff] }
  0xb9   :  { %1207 = vmatprep.subr.bf16.mxu1 %v1206_v11  ;;  %v658_v11 = vld [vmem:[#allocation6 + $0xe8] sm:$0xff]  ;;  %v1196_v14 = vpack.c.bf16 %v640_v6, %v639_v5  ;;  %v1228_v15 = vpack.c.bf16 %v672_v9, %v671_v7 }
  0xba   :  { %477 = vmatmul.mubr.f32.vlgmr.msra.gmra.mrb[0].mxu0 %v61_v17  ;;  %v1198_v16 = vpack.c.bf16 %v658_v11, %v657_v10 }
  0xbb   :  { %619 = vmatmul.mubr.f32.vlgmr.msra.gmra.mrb[0].mxu1 %v61_v17  ;;  %1177 = vmatpush3.bf16.msra.mxu0 %v1176_v18  ;;  %v1230_v17 = vpack.c.bf16 %v690_v13, %v689_v12  ;;  %v641_v18 = vld [vmem:[#allocation6 + $0x60] sm:$0xff] }
  0xbc   :  { %1209 = vmatpush3.bf16.msra.mxu1 %v1208_v19  ;;  %1179 = vmatprep.subr.bf16.mxu0 %v1178_v20  ;;  %v642_v19 = vld [vmem:[#allocation6 + $0x68] sm:$0xff]  ;;  %v673_v20 = vld [vmem:[#allocation6 + $0x160] sm:$0xff] }
  0xbd   :  { %1211 = vmatprep.subr.bf16.mxu1 %v1210_v24  ;;  %v1200_v21 = vpack.c.bf16 %v642_v19, %v641_v18  ;;  %v1232_v23 = vpack.c.bf16 %v674_v22, %v673_v20  ;;  %v659_v24 = vld [vmem:[#allocation6 + $0xf0] sm:$0xff] }
  0xbe   :  { %v1202_v27 = vpack.c.bf16 %v660_v25, %v659_v24 }
  0xbf   :  { %1181 = vmatpush3.bf16.msra.mxu0 %v1180_v30  ;;  %v644_v30 = vld [vmem:[#allocation6 + $0x78] sm:$0xff] }
  0xc0   :  { %1213 = vmatpush3.bf16.msra.mxu1 %v1212_v31  ;;  %1183 = vmatprep.subr.bf16.mxu0 %v1182_v32  ;;  %v1234_v31 = vpack.c.bf16 %v692_v28, %v691_v26  ;;  %v1204_v32 = vpack.c.bf16 %v644_v30, %v643_v29 }
  0xc1   :  { %1215 = vmatprep.subr.bf16.mxu1 %v1214_v36  ;;  %v321_v36 = vlaneseq }
  0xc3   :  { %1185 = vmatpush3.bf16.msra.mxu0 %v1184_v42  ;;  %v322_v37 = vshrl.u32 %v321_v36, 7 }
  0xc4   :  { %1217 = vmatpush3.bf16.msra.mxu1 %v1216_v43  ;;  %1187 = vmatprep.subr.bf16.mxu0 %v1186_v44 }
  0xc5   :  { %1219 = vmatprep.subr.bf16.mxu1 %v1218_v48  ;;  %v323_v38 = vsub.s32 0, %v322_v37  ;;  %v331_v40 = vsub.s32 2, %v322_v37  ;;  %v327_v41 = vsub.s32 1, %v322_v37  ;;  %v335_v42 = vsub.s32 3, %v322_v37 }
  0xc7   :  { %1189 = vmatpush3.bf16.msra.mxu0 %v1188_v54  ;;  %v324_v43 = vrot.slane %v319_v39, %v323_v38  ;;  %v332_v44 = vrot.slane %v319_v39, %v331_v40  ;;  %v328_v45 = vrot.slane %v319_v39, %v327_v41  ;;  %v336_v46 = vrot.slane %v319_v39, %v335_v42 }
  0xc8   :  { %1221 = vmatpush3.bf16.msra.mxu1 %v1220_v55  ;;  %1191 = vmatprep.subr.bf16.mxu0 %v1190_v56 }
  0xc9   :  { %1223 = vmatprep.subr.bf16.mxu1 %v1222_v60 }
  0xcb   :  { %1193 = vmatpush3.bf16.msra.mxu0 %v1192_v2 }
  0xcc   :  { %1225 = vmatpush3.bf16.msra.mxu1 %v1224_v3  ;;  %1195 = vmatprep.subr.bf16.mxu0 %v1194_v4 }
  0xcd   :  { %1227 = vmatprep.subr.bf16.mxu1 %v1226_v8 }
  0xcf   :  { %1197 = vmatpush3.bf16.msra.mxu0 %v1196_v14 }
  0xd0   :  { %1229 = vmatpush3.bf16.msra.mxu1 %v1228_v15  ;;  %1199 = vmatprep.subr.bf16.mxu0 %v1198_v16 }
  0xd1   :  { %1231 = vmatprep.subr.bf16.mxu1 %v1230_v17 }
  0xd3   :  { %1201 = vmatpush3.bf16.msra.mxu0 %v1200_v21 }
  0xd4   :  { %1233 = vmatpush3.bf16.msra.mxu1 %v1232_v23  ;;  %1203 = vmatprep.subr.bf16.mxu0 %v1202_v27 }
  0xd5   :  { %1235 = vmatprep.subr.bf16.mxu1 %v1234_v31 }
  0xd7   :  { %1205 = vmatpush3.bf16.msra.mxu0 %v1204_v32 }
  0xd8   :  { %1237 = vmatpush3.bf16.msra.mxu1 %v1236_v35 }
 0x18d   :  { %v478_v47 = vpop.f32.mrb[0].mxu0 }
 0x18e   :  { %v1238_v48 = vadd.f32 %v478_v47, %v324_v43  ;;  %v620_v49 = vpop.f32.mrb[0].mxu1  ;;  %v480_v50 = vpop.f32.mrb[1].mxu0 }
 0x18f   :  { %v1240_v51 = vadd.f32 %v620_v49, %v332_v44  ;;  %v1239_v52 = vadd.f32 %v480_v50, %v328_v45  ;;  %v622_v53 = vpop.f32.mrb[1].mxu1 }
 0x190   :  { %v1241_v54 = vadd.f32 %v622_v53, %v336_v46  ;;  %v625_v56 = vmax.f32 %v1238_v48, 0.0 }
 0x191   :  { %v626_v55 = vmax.f32 %v1239_v52, 0.0  ;;  %v627_v58 = vmax.f32 %v1240_v51, 0.0 }
 0x192   :  { %v628_v57 = vmax.f32 %v1241_v54, 0.0 }
 0x193   :  { %764 = vmatprep.mubr.f32.mxu0 %v626_v55 }
 0x194   :  { %834 = vmatprep.mubr.f32.mxu1 %v628_v57  ;;  %765 = vmatmul.mubr.f32.vlgmr.msra.gmra.mrb[2].mxu0 %v625_v56 }
 0x195   :  { %835 = vmatmul.mubr.f32.vlgmr.msra.gmra.mrb[2].mxu1 %v627_v58 }
 0x267   :  { %v880_v59 = vpop.f32.mrb[2].mxu0 }
 0x268   :  { %v915_v60 = vpop.f32.mrb[2].mxu1  ;;  %v881_v62 = vpop.f32.mrb[3].mxu0 }
 0x269   :  { %v882_v63 = vadd.f32 %v881_v62, %v880_v59  ;;  %v916_v0 = vpop.f32.mrb[3].mxu1 }
 0x26a   :  { %v917_v1 = vadd.f32 %v916_v0, %v915_v60 }
 0x26b   :  { %v767_v2 = vadd.f32 %v882_v63, %v847_v61 }
 0x26d   :  { %v837_v3 = vadd.f32 %v917_v1, %v767_v2 }
 0x26f   :  { %840 = vst [vmem:[%s1410_s5] sm:$0xff] %v837_v3 }
 0x270   :  { %845 = vsyncpa [#allocation3], 1 }
 0x271   :  { %846 = vsyncpa [#allocation5], 1 }

</bundles_post_ra>
